<compile_context>
chip_gen: v6e
topology: v6e:2x2x1
jax: 0.10.0
libtpu: 0.0.40
codegen_flags: <defaults>
</compile_context>

<pallas_src>
import math
import functools

import jax
import jax.numpy as jnp
from jax.experimental import pallas as pl
from jax.experimental.pallas import tpu as pltpu


def _round_up(n, m):
    return ((n + m - 1) // m) * m


def mlp_kernel(x_ref, p_ref, o_ref, *, layer_meta):
    """Fused MLP forward over one batch tile.

    x_ref : (tb, n_in)   f32 activations
    p_ref : (rows, lane) f32 packed parameter buffer (single DMA)
    layer_meta : static tuple of (w_row_off, in_dim, b_row_off, out_dim)
    """
    h = x_ref[...]
    n_layers = len(layer_meta)
    for i, (w_off, in_dim, b_off, out_dim) in enumerate(layer_meta):
        w = p_ref[pl.ds(w_off, in_dim), pl.ds(0, out_dim)]     # static slice of packed buf
        b = p_ref[pl.ds(b_off, 1), pl.ds(0, out_dim)]          # (1, out) -> broadcasts
        h = jnp.dot(h, w, preferred_element_type=jnp.float32) + b
        if i < n_layers - 1:                                    # hidden layers: ReLU
            h = jnp.maximum(h, 0.0)
    o_ref[...] = h.astype(o_ref.dtype)


def _pack_params(weights, biases, task_context, n_inputs):
    """Fold task_context into layer-0 bias and pack all params into one
    (rows, lane_width) f32 buffer with 8-row-aligned per-layer slots.

    Returns (packed_buffer, layer_meta) where layer_meta is static metadata.
    """
    eff_w = list(weights)
    eff_b = list(biases)
    C = task_context.shape[0]
    if C:
        # cat([x, ctx]) @ W0 + b0 == x @ W0[:n_in] + (ctx @ W0[n_in:] + b0)
        eff_b[0] = biases[0] + task_context @ weights[0][n_inputs:]
        eff_w[0] = weights[0][:n_inputs]

    lane_w = _round_up(max(w.shape[1] for w in eff_w), 128)
    blocks, meta, row = [], [], 0
    for w, b in zip(eff_w, eff_b):
        in_dim, out_dim = w.shape
        w_rows = _round_up(in_dim, 8)
        blocks.append(jnp.zeros((w_rows, lane_w), jnp.float32)
                      .at[:in_dim, :out_dim].set(w.astype(jnp.float32)))
        blocks.append(jnp.zeros((8, lane_w), jnp.float32)
                      .at[0, :out_dim].set(b.astype(jnp.float32)))
        meta.append((row, in_dim, row + w_rows, out_dim))
        row += w_rows + 8
    return jnp.concatenate(blocks, axis=0), tuple(meta)


def maml_forward(x, task_context, weights, biases, *, batch_tile=256):
    """Pallas implementation of MamlModel.forward."""
    B, n_in = x.shape
    n_out = weights[-1].shape[1]
    assert weights[0].shape[0] == n_in + task_context.shape[0]

    packed, meta = _pack_params(weights, biases, task_context, n_in)

    # Batch tiling: single full tile when small, 8-aligned tiles otherwise.
    pad_B = _round_up(B, 8)
    tb = pad_B if pad_B <= batch_tile else batch_tile
    pad_B = _round_up(pad_B, tb)
    if pad_B != B:
        x = jnp.pad(x, ((0, pad_B - B), (0, 0)))
    grid = (pad_B // tb,)

    flops = 2 * pad_B * sum(in_d * out_d for _, in_d, _, out_d in meta)
    bytes_accessed = 4 * (pad_B * n_in + packed.size + pad_B * n_out)

    out = pl.pallas_call(
        functools.partial(mlp_kernel, layer_meta=meta),
        out_shape=jax.ShapeDtypeStruct((pad_B, n_out), jnp.float32),
        grid=grid,
        in_specs=[
            pl.BlockSpec((tb, n_in), lambda i: (i, 0)),        # batch tile of x
            pl.BlockSpec(packed.shape, lambda i: (0, 0)),      # packed params, one DMA
        ],
        out_specs=pl.BlockSpec((tb, n_out), lambda i: (i, 0)),
        compiler_params=pltpu.CompilerParams(
            dimension_semantics=("parallel",)),                # v7x: shard batch tiles over TCs
        cost_estimate=pl.CostEstimate(
            flops=flops, transcendentals=0, bytes_accessed=bytes_accessed),
    )(x, packed)

    return out[:B] if pad_B != B else out


def init_params(key, n_inputs, n_outputs, n_weights, num_context_params):
    """Deterministic re-implementation of MamlModel.__init__/_reset_parameters."""
    nodes_per_layer = list(n_weights) + [n_outputs]
    task_context = jnp.zeros((num_context_params,), jnp.float32)
    weights, biases = [], []
    prev = n_inputs + num_context_params
    for n in nodes_per_layer:
        stdv = 1.0 / math.sqrt(n)
        key, kw, kb = jax.random.split(key, 3)
        weights.append(jax.random.uniform(kw, (prev, n), jnp.float32, -stdv, stdv))
        biases.append(jax.random.uniform(kb, (n,), jnp.float32, -stdv, stdv))
        prev = n
    return task_context, weights, biases


def reference_forward(x, task_context, weights, biases):
    """Pure-JAX reference matching the PyTorch forward (concat + F.linear chain)."""
    B = x.shape[0]
    if task_context.shape[0] != 0:
        ctx = jnp.broadcast_to(task_context[None, :], (B, task_context.shape[0]))
        h = jnp.concatenate([x, ctx], axis=1)
    else:
        h = x
    for i in range(len(weights) - 1):
        h = jnp.maximum(h @ weights[i] + biases[i], 0.0)
    return h @ weights[-1] + biases[-1]


if __name__ == "__main__":
    # Small MAML regression MLP config.
    n_inputs = 4
    n_outputs = 2
    n_weights = [32, 32]          # two hidden layers
    num_context_params = 4

    key = jax.random.PRNGKey(0)
    key, kx, kc = jax.random.split(key, 3)

    task_context, weights, biases = init_params(
        key, n_inputs, n_outputs, n_weights, num_context_params
    )
    # Make the context non-trivial so the fold path is actually exercised.
    task_context = 0.1 * jax.random.normal(kc, (num_context_params,), jnp.float32)

    ok = True
    for batch in (8, 20):         # 8: aligned tile; 20: padded batch path
        key, kb = jax.random.split(key)
        x = jax.random.normal(kb, (batch, n_inputs), jnp.float32)

        y = maml_forward(x, task_context, weights, biases)
        y = jax.block_until_ready(y)
        y_ref = reference_forward(x, task_context, weights, biases)

        ok &= (y.shape == (batch, n_outputs))
        ok &= bool(jnp.allclose(y, y_ref, atol=1e-5, rtol=1e-5))

    assert ok, "mismatch vs reference"
    print("KERNEL_OK")
</pallas_src>

<mosaic_0001>
module attributes {stable_mosaic.version = 11 : i64} {
  func.func @mlp_kernel(%arg0: i32, %arg1: memref<8x4xf32, #tpu.memory_space<vmem>>, %arg2: memref<96x128xf32, #tpu.memory_space<vmem>>, %arg3: memref<8x2xf32, #tpu.memory_space<vmem>>) attributes {dimension_semantics = [#tpu.dimension_semantics<parallel>], iteration_bounds = array<i64: 1>, scalar_prefetch = 0 : i64, scratch_operands = 0 : i64, tpu.core_type = #tpu.core_type<tc>, window_params = [{transform_indices = @transform_0, window_bounds = array<i64: 8, 4>}, {pipeline_mode = #tpu.pipeline_mode<synchronous>, transform_indices = @transform_1, window_bounds = array<i64: 96, 128>}, {transform_indices = @transform_2, window_bounds = array<i64: 8, 2>}]} {
    %c0 = arith.constant 0 : index
    %c0_0 = arith.constant 0 : index
    %0 = vector.load %arg1[%c0, %c0_0] : memref<8x4xf32, #tpu.memory_space<vmem>>, vector<8x4xf32>
    %c0_1 = arith.constant 0 : index
    %c0_2 = arith.constant 0 : index
    %1 = vector.load %arg2[%c0_1, %c0_2] : memref<96x128xf32, #tpu.memory_space<vmem>>, vector<4x32xf32>
    %c8 = arith.constant 8 : index
    %c0_3 = arith.constant 0 : index
    %2 = vector.load %arg2[%c8, %c0_3] : memref<96x128xf32, #tpu.memory_space<vmem>>, vector<1x32xf32>
    %cst = arith.constant dense<0.000000e+00> : vector<8x32xf32>
    %3 = tpu.matmul %0, %1, %cst {dimension_numbers = #tpu.dot_dimension_numbers<[1], [0], [0], [1], [0, 0, 1, 1], [], []>} : vector<8x4xf32>, vector<4x32xf32>, vector<8x32xf32> -> vector<8x32xf32>
    %4 = vector.broadcast %2 : vector<1x32xf32> to vector<8x32xf32>
    %5 = arith.addf %3, %4 : vector<8x32xf32>
    %cst_4 = arith.constant 0.000000e+00 : f32
    %6 = vector.broadcast %cst_4 : f32 to vector<8x32xf32>
    %7 = arith.maximumf %5, %6 : vector<8x32xf32>
    %c16 = arith.constant 16 : index
    %c0_5 = arith.constant 0 : index
    %8 = vector.load %arg2[%c16, %c0_5] : memref<96x128xf32, #tpu.memory_space<vmem>>, vector<32x32xf32>
    %c48 = arith.constant 48 : index
    %c0_6 = arith.constant 0 : index
    %9 = vector.load %arg2[%c48, %c0_6] : memref<96x128xf32, #tpu.memory_space<vmem>>, vector<1x32xf32>
    %cst_7 = arith.constant dense<0.000000e+00> : vector<8x32xf32>
    %10 = tpu.matmul %7, %8, %cst_7 {dimension_numbers = #tpu.dot_dimension_numbers<[1], [0], [0], [1], [0, 0, 1, 1], [], []>} : vector<8x32xf32>, vector<32x32xf32>, vector<8x32xf32> -> vector<8x32xf32>
    %11 = vector.broadcast %9 : vector<1x32xf32> to vector<8x32xf32>
    %12 = arith.addf %10, %11 : vector<8x32xf32>
    %cst_8 = arith.constant 0.000000e+00 : f32
    %13 = vector.broadcast %cst_8 : f32 to vector<8x32xf32>
    %14 = arith.maximumf %12, %13 : vector<8x32xf32>
    %c56 = arith.constant 56 : index
    %c0_9 = arith.constant 0 : index
    %15 = vector.load %arg2[%c56, %c0_9] : memref<96x128xf32, #tpu.memory_space<vmem>>, vector<32x2xf32>
    %c88 = arith.constant 88 : index
    %c0_10 = arith.constant 0 : index
    %16 = vector.load %arg2[%c88, %c0_10] : memref<96x128xf32, #tpu.memory_space<vmem>>, vector<1x2xf32>
    %cst_11 = arith.constant dense<0.000000e+00> : vector<8x2xf32>
    %17 = tpu.matmul %14, %15, %cst_11 {dimension_numbers = #tpu.dot_dimension_numbers<[1], [0], [0], [1], [0, 0, 1, 1], [], []>} : vector<8x32xf32>, vector<32x2xf32>, vector<8x2xf32> -> vector<8x2xf32>
    %18 = vector.broadcast %16 : vector<1x2xf32> to vector<8x2xf32>
    %19 = arith.addf %17, %18 : vector<8x2xf32>
    %c0_12 = arith.constant 0 : index
    %c0_13 = arith.constant 0 : index
    %20 = vector.load %arg3[%c0_12, %c0_13] : memref<8x2xf32, #tpu.memory_space<vmem>>, vector<8x2xf32>
    tpu.vector_store %arg3[%c0_12, %c0_13], %19 {strides = array<i32>} : memref<8x2xf32, #tpu.memory_space<vmem>>, vector<8x2xf32>,
    return
  }
  func.func @transform_0(%arg0: i32) -> (i32, i32) {
    %c0_i32 = arith.constant 0 : i32
    %c0_i32_0 = arith.constant 0 : i32
    return %arg0, %c0_i32 : i32, i32
  }
  func.func @transform_1(%arg0: i32) -> (i32, i32) {
    %c0_i32 = arith.constant 0 : i32
    %c0_i32_0 = arith.constant 0 : i32
    %c0_i32_1 = arith.constant 0 : i32
    return %c0_i32, %c0_i32_0 : i32, i32
  }
  func.func @transform_2(%arg0: i32) -> (i32, i32) {
    %c0_i32 = arith.constant 0 : i32
    %c0_i32_0 = arith.constant 0 : i32
    return %arg0, %c0_i32 : i32, i32
  }
}

</mosaic_0001>

<bundles_post_ra>
// kernel: tpu_custom_call.1
= control target key start
LH: loop header
LB: loop body
LE: loop exit
PB: predicated region body
PF: predicated region fallthrough
CT: control target
= control target key end

     0   :  { %7 = vsyncpa [#allocation3], 0  ;;  %s357_s9 = smov [#allocation2]   ;;  %s388_s0 = inlined_call_operand.vmem [shape: f32[8,4], index: 0, kind: input, shape index: {}]   ;;  %s389_s1 = inlined_call_operand.hbm [shape: f32[96,128], index: 1, kind: input, shape index: {}]   ;;  %s390_s2 = inlined_call_operand.vmem [shape: f32[8,2], index: 2, kind: output, shape index: {}]  }
   0x1   :  { %s15_s10 = sshll.u32 %s357_s9, 4  ;;  %s16_s10 = int_to_ptr.vmem [resolvable:$true] %s15_s10 }
   0x2   :  { %s343_s11 = scalar_lea.vmem %s16_s10, 1536  ;;  %p348_p1 = scmp.lt.s32.totalorder %s16_s10, %s16_s10 }
   0x3   :  { %p344_p0 = scmp.ne.s32.totalorder %s16_s10, %s343_s11  ;;  %p349_p2 = scmp.lt.s32.totalorder %s343_s11, %s343_s11 }
   0x5   :  { %p350_p3 = por %p349_p2, %p348_p1 }
   0x7   :  { %p351_p4 = pnand %p350_p3, %p344_p0 }
   0x9   :  { %354 = shalt.err (!%p351_p4)
}
   0xa   :  { %s358_s12 = smov 128   ;;  %s359_s13 = smov 8  }
   0xb   :  { %21 = dma.hbm_to_vmem [thread:$0]  %s389_s1, 1536, %s16_s10, [#allocation3], %s358_s12, %s358_s12, %s359_s13  }
   0xc   :  { %355 = dma.done.wait [#allocation3], 1536  }
   0xd   :  { %356 = vsyncadd [#allocation3], 4294965760  ;;  %v360_v0 = vmov 0.0   ;;  %vm361_vm0 = vmmov 0   ;;  %vm36_vm1 = vcmask 1043456   ;;  %vm32_vm2 = vcmask 31744  }
   0xe   :  { %303 = vmatprep.subr.mxu0 %v360_v0  ;;  %305 = vmatprep.mubr.msk.f32.mxu0 %vm361_vm0, %v360_v0  ;;  %v26_v1 = vld [vmem:[#allocation2] sm:$0xf]  ;;  %v114_v3 = vld [vmem:[#allocation2 + $0x28] sm:$0xff]  ;;  %v112_v5 = vld [vmem:[#allocation2 + $0x18] sm:$0xff]  ;;  %vm120_vm3 = vcmask 261120   ;;  %vm277_vm4 = vcmask 15360  }
   0xf   :  { %308 = vmatprep.subr.mxu1 %v360_v0  ;;  %316 = vmatprep.mubr.msk.f32.mxu1 %vm361_vm0, %v360_v0  ;;  %v25_v2 = vld [vmem:[%s388_s0] sm:$0xff]  ;;  %v111_v6 = vld [vmem:[#allocation2 + $0x10] sm:$0xff]  ;;  %v284_v8 = vld [vmem:[#allocation2 + $0x8] ss:$0 sm:$0xff] }
  0x10   :  { %304 = vmatpush3.msk.msra.mxu0 %vm36_vm1, %v26_v1  ;;  %309 = vmatpush3.msra.mxu1 %v114_v3  ;;  %v113_v4 = vld [vmem:[#allocation2 + $0x20] sm:$0xff]  ;;  %v198_v7 = vld [vmem:[#allocation2 + $0x50] sm:$0xff]  ;;  %v197_v13 = vld [vmem:[#allocation2 + $0x48] sm:$0xff] }
  0x11   :  { %306 = vmatmul.mubr.msk.f32.vlgmr.msra.gmra.mxu0 %vm32_vm2, %v25_v2  ;;  %310 = vmatprep.subr.mxu1 %v360_v0  ;;  %v196_v14 = vld [vmem:[#allocation2 + $0x40] sm:$0xff]  ;;  %v195_v15 = vld [vmem:[#allocation2 + $0x38] sm:$0xff]  ;;  %v287_v16 = vld [vmem:[#allocation2 + $0x30] ss:$0 sm:$0xff] }
  0x12   :  { %319 = vmatprep.subr.mxu0 %v360_v0  ;;  %327 = vmatprep.mubr.msk.f32.mxu0 %vm361_vm0, %v360_v0  ;;  %v289_v21 = vld [vmem:[#allocation2 + $0x58] ss:$0 sm:$0xff] }
  0x13   :  { %311 = vmatpush3.msra.mxu1 %v113_v4  ;;  %320 = vmatpush3.msra.mxu0 %v198_v7 }
  0x14   :  { %312 = vmatprep.subr.mxu1 %v360_v0  ;;  %321 = vmatprep.subr.mxu0 %v360_v0 }
  0x15   :  { %313 = vmatpush3.msra.mxu1 %v112_v5  ;;  %322 = vmatpush3.msra.mxu0 %v197_v13 }
  0x16   :  { %314 = vmatprep.subr.mxu1 %v360_v0  ;;  %323 = vmatprep.subr.mxu0 %v360_v0 }
  0x17   :  { %315 = vmatpush3.msra.mxu1 %v111_v6  ;;  %324 = vmatpush3.msra.mxu0 %v196_v14 }
  0x18   :  { %325 = vmatprep.subr.mxu0 %v360_v0 }
  0x19   :  { %326 = vmatpush3.msra.mxu0 %v195_v15 }
  0xd1   :  { %v106_v9 = vpop.f32.mrf.mxu0 }
  0xd2   :  { %v107_v10 = vadd.f32 %v284_v8, %v106_v9 }
  0xd3   :  { %v307_v11 = vpop.f32.mrf.mxu0 }
  0xd4   :  { %v110_v12 = vmax.f32 %v107_v10, 0.0 }
  0xd6   :  { %317 = vmatmul.mubr.msk.f32.vlgmr.msra.gmra.mxu1 %vm120_vm3, %v110_v12 }
 0x196   :  { %v190_v17 = vpop.f32.mrf.mxu1 }
 0x197   :  { %v191_v18 = vadd.f32 %v287_v16, %v190_v17 }
 0x198   :  { %v318_v19 = vpop.f32.mrf.mxu1 }
 0x199   :  { %v194_v20 = vmax.f32 %v191_v18, 0.0 }
 0x19b   :  { %328 = vmatmul.mubr.msk.f32.vlgmr.msra.gmra.mxu0 %vm120_vm3, %v194_v20 }
 0x25b   :  { %v273_v22 = vpop.f32.mrf.mxu0 }
 0x25c   :  { %v274_v23 = vadd.f32 %v289_v21, %v273_v22 }
 0x25d   :  { %v329_v24 = vpop.f32.mrf.mxu0 }
 0x25e   :  { %278 = vst.msk [vmem:[%s390_s2] sm:$0xff] %vm277_vm4, %v274_v23 }
 0x25f   :  { %283 = vsyncpa [#allocation3], 1 }

</bundles_post_ra>
